<compile_context>
chip_gen: v5e
topology: v5e:2x2
jax: 0.10.0
libtpu: 0.0.40
codegen_flags: <defaults>
</compile_context>

<pallas_src>
import jax
import jax.numpy as jnp
from jax.experimental import pallas as pl
from jax.experimental.pallas import tpu as pltpu


def _mlp_kernel(x_ref, wb1_ref, wb2_ref, wb3_ref, o_ref):
    """Fused Linear->ReLU->Linear->ReLU->Linear on one batch tile.

    Each wb*_ref is an augmented (fan_in + 1, fan_out) bf16 matrix whose last
    row is the bias. Matmuls are bf16 on the MXU with f32 accumulation; the
    bias add and ReLU are f32 (v5e VPU has no bf16).
    """

    def layer(h_bf16, wb_ref, *, relu):
        k = wb_ref.shape[0] - 1  # fan_in rows; last row is the bias
        y = jnp.dot(h_bf16, wb_ref[:k, :], preferred_element_type=jnp.float32)
        y = y + wb_ref[k:, :].astype(jnp.float32)
        return jnp.maximum(y, 0.0) if relu else y

    h = layer(x_ref[...].astype(jnp.bfloat16), wb1_ref, relu=True)
    h = layer(h.astype(jnp.bfloat16), wb2_ref, relu=True)
    out = layer(h.astype(jnp.bfloat16), wb3_ref, relu=False)
    o_ref[...] = out.astype(o_ref.dtype)


def _choose_batch_tile(batch, max_tile):
    """Batch tile: multiple of 8, <= max_tile, EVEN block count (v7x 2-TC split)."""
    n_blocks = 2 * ((batch + 2 * max_tile - 1) // (2 * max_tile))
    tile = (batch + n_blocks - 1) // n_blocks
    return ((tile + 7) // 8) * 8


def linear_qnet_forward(x, params, *, max_block_batch=1024):
    """Fused 3-layer MLP forward.

    x: (B, input_size) float32 (cast to bf16 inside the kernel).
    params: dict with wb1 (in+1, h1), wb2 (h1+1, h2), wb3 (h2+1, out), all
            bf16, bias stored as the last row of each matrix.
    Returns (B, out) float32.
    """
    wb1, wb2, wb3 = params["wb1"], params["wb2"], params["wb3"]
    batch, _ = x.shape
    out_size = wb3.shape[1]
    out_shape = jax.ShapeDtypeStruct((batch, out_size), jnp.float32)

    if batch <= max_block_batch:
        # Tiny-batch / inference path: single block, no grid. Per-grid-step
        # overhead (~0.35 us) would dominate at these sizes; 4 input DMAs total.
        vmem = lambda: pl.BlockSpec(memory_space=pltpu.VMEM)
        return pl.pallas_call(
            _mlp_kernel,
            out_shape=out_shape,
            in_specs=[vmem(), vmem(), vmem(), vmem()],
            out_specs=vmem(),
        )(x, wb1, wb2, wb3)

    # Large-batch / training path: tile the batch (even number of blocks so the
    # "parallel" axis splits evenly across v7x's two TensorCores), keep the
    # tiny weights resident in VMEM via constant index_maps, and stream x / out
    # through the auto-pipeline. No explicit batch pad: the ragged last block
    # is handled by Pallas (its out-of-bounds rows are never written back and
    # never feed a cross-batch reduction).
    tb = _choose_batch_tile(batch, max_block_batch)
    grid = (pl.cdiv(batch, tb),)
    return pl.pallas_call(
        _mlp_kernel,
        out_shape=out_shape,
        grid=grid,
        in_specs=[
            pl.BlockSpec((tb, x.shape[1]), lambda i: (i, 0)),
            pl.BlockSpec(wb1.shape, lambda i: (0, 0)),
            pl.BlockSpec(wb2.shape, lambda i: (0, 0)),
            pl.BlockSpec(wb3.shape, lambda i: (0, 0)),
        ],
        out_specs=pl.BlockSpec((tb, out_size), lambda i: (i, 0)),
        compiler_params=pltpu.CompilerParams(
            dimension_semantics=("parallel",)),
    )(x, wb1, wb2, wb3)


def pack_layer(w, b):
    """Pack an (fan_in, fan_out) weight (torch weight transposed) and a
    (fan_out,)-ish bias into one bf16 augmented matrix (fan_in + 1, fan_out)."""
    b = jnp.reshape(b, (1, w.shape[1]))
    return jnp.concatenate([w, b], axis=0).astype(jnp.bfloat16)


def init_params(key, input_size, hidden1_size, hidden2_size, output_size):
    """Deterministic init mimicking PyTorch nn.Linear (uniform +-1/sqrt(fan_in)).

    Pad / transpose / bf16-cast / bias-fold all happen ONCE here, never in the
    forward path.
    """
    ks = jax.random.split(key, 6)

    def layer(kw, kb, fan_in, fan_out):
        bound = 1.0 / jnp.sqrt(jnp.float32(fan_in))
        w = jax.random.uniform(kw, (fan_in, fan_out), jnp.float32, -bound, bound)
        b = jax.random.uniform(kb, (1, fan_out), jnp.float32, -bound, bound)
        return pack_layer(w, b)

    return {
        "wb1": layer(ks[0], ks[1], input_size, hidden1_size),
        "wb2": layer(ks[2], ks[3], hidden1_size, hidden2_size),
        "wb3": layer(ks[4], ks[5], hidden2_size, output_size),
    }


def _reference_forward(x, params):
    """Pure-JAX reference mirroring the kernel's precision (bf16 matmul inputs
    and bf16-stored biases, f32 accumulation and elementwise).

    Note: this deviates from PyTorch's full-f32 Linear at the bf16 level —
    acceptable for an RL Q-network, documented here.
    """

    def layer(h, wb, relu):
        w = wb[:-1].astype(jnp.float32)
        b = wb[-1:].astype(jnp.float32)
        y = jnp.dot(h.astype(jnp.bfloat16).astype(jnp.float32), w) + b
        return jnp.maximum(y, 0.0) if relu else y

    h = layer(x, params["wb1"], True)
    h = layer(h, params["wb2"], True)
    return layer(h, params["wb3"], False)


# TODO(synk): save()/load() (torch checkpoint file I/O) are host-side utilities
# with no kernel equivalent; omitted.

if __name__ == "__main__":
    # Q-network shapes: batch=8, input=16, h1=32, h2=32, out=4
    batch, input_size, hidden1, hidden2, output_size = 8, 16, 32, 32, 4

    key = jax.random.PRNGKey(0)
    kx, kp, kbig = jax.random.split(key, 3)
    params = init_params(kp, input_size, hidden1, hidden2, output_size)

    # Tiny-batch (single-block, latency-critical) path.
    x = jax.random.normal(kx, (batch, input_size), jnp.float32)
    out_small = jax.block_until_ready(linear_qnet_forward(x, params))
    ref_small = _reference_forward(x, params)
    assert out_small.shape == (batch, output_size)
    assert jnp.allclose(out_small, ref_small, atol=2e-2, rtol=2e-2)

    # Large-batch (batch-tiled grid, resident weights, even parallel blocks)
    # path; 1060 is not a multiple of the chosen tile -> exercises the ragged
    # last block (no explicit padding).
    big_batch = 1060
    x_big = jax.random.normal(kbig, (big_batch, input_size), jnp.float32)
    out_big = jax.block_until_ready(linear_qnet_forward(x_big, params))
    ref_big = _reference_forward(x_big, params)
    assert out_big.shape == (big_batch, output_size)
    assert jnp.allclose(out_big, ref_big, atol=2e-2, rtol=2e-2)

    print("KERNEL_OK")
</pallas_src>

<mosaic_0001>
module attributes {stable_mosaic.version = 11 : i64} {
  func.func @_mlp_kernel(%arg0: memref<8x16xf32, #tpu.memory_space<vmem>>, %arg1: memref<17x32xbf16, #tpu.memory_space<vmem>>, %arg2: memref<33x32xbf16, #tpu.memory_space<vmem>>, %arg3: memref<33x4xbf16, #tpu.memory_space<vmem>>, %arg4: memref<8x4xf32, #tpu.memory_space<vmem>>) attributes {dimension_semantics = [], scalar_prefetch = 0 : i64, scratch_operands = 0 : i64, tpu.core_type = #tpu.core_type<tc>} {
    %c0 = arith.constant 0 : index
    %c0_0 = arith.constant 0 : index
    %0 = vector.load %arg0[%c0, %c0_0] : memref<8x16xf32, #tpu.memory_space<vmem>>, vector<8x16xf32>
    %1 = arith.truncf %0 : vector<8x16xf32> to vector<8x16xbf16>
    %c0_1 = arith.constant 0 : index
    %c0_2 = arith.constant 0 : index
    %2 = vector.load %arg1[%c0_1, %c0_2] : memref<17x32xbf16, #tpu.memory_space<vmem>>, vector<16x32xbf16>
    %cst = arith.constant dense<0.000000e+00> : vector<8x32xf32>
    %3 = tpu.matmul %1, %2, %cst {dimension_numbers = #tpu.dot_dimension_numbers<[1], [0], [0], [1], [0, 0, 1, 1], [], []>} : vector<8x16xbf16>, vector<16x32xbf16>, vector<8x32xf32> -> vector<8x32xf32>
    %c16 = arith.constant 16 : index
    %c0_3 = arith.constant 0 : index
    %4 = vector.load %arg1[%c16, %c0_3] : memref<17x32xbf16, #tpu.memory_space<vmem>>, vector<1x32xbf16>
    %5 = arith.extf %4 : vector<1x32xbf16> to vector<1x32xf32>
    %6 = vector.broadcast %5 : vector<1x32xf32> to vector<8x32xf32>
    %7 = arith.addf %3, %6 : vector<8x32xf32>
    %cst_4 = arith.constant 0.000000e+00 : f32
    %8 = vector.broadcast %cst_4 : f32 to vector<8x32xf32>
    %9 = arith.maximumf %7, %8 : vector<8x32xf32>
    %10 = arith.truncf %9 : vector<8x32xf32> to vector<8x32xbf16>
    %c0_5 = arith.constant 0 : index
    %c0_6 = arith.constant 0 : index
    %11 = vector.load %arg2[%c0_5, %c0_6] : memref<33x32xbf16, #tpu.memory_space<vmem>>, vector<32x32xbf16>
    %cst_7 = arith.constant dense<0.000000e+00> : vector<8x32xf32>
    %12 = tpu.matmul %10, %11, %cst_7 {dimension_numbers = #tpu.dot_dimension_numbers<[1], [0], [0], [1], [0, 0, 1, 1], [], []>} : vector<8x32xbf16>, vector<32x32xbf16>, vector<8x32xf32> -> vector<8x32xf32>
    %c32 = arith.constant 32 : index
    %c0_8 = arith.constant 0 : index
    %13 = vector.load %arg2[%c32, %c0_8] : memref<33x32xbf16, #tpu.memory_space<vmem>>, vector<1x32xbf16>
    %14 = arith.extf %13 : vector<1x32xbf16> to vector<1x32xf32>
    %15 = vector.broadcast %14 : vector<1x32xf32> to vector<8x32xf32>
    %16 = arith.addf %12, %15 : vector<8x32xf32>
    %cst_9 = arith.constant 0.000000e+00 : f32
    %17 = vector.broadcast %cst_9 : f32 to vector<8x32xf32>
    %18 = arith.maximumf %16, %17 : vector<8x32xf32>
    %19 = arith.truncf %18 : vector<8x32xf32> to vector<8x32xbf16>
    %c0_10 = arith.constant 0 : index
    %c0_11 = arith.constant 0 : index
    %20 = vector.load %arg3[%c0_10, %c0_11] : memref<33x4xbf16, #tpu.memory_space<vmem>>, vector<32x4xbf16>
    %cst_12 = arith.constant dense<0.000000e+00> : vector<8x4xf32>
    %21 = tpu.matmul %19, %20, %cst_12 {dimension_numbers = #tpu.dot_dimension_numbers<[1], [0], [0], [1], [0, 0, 1, 1], [], []>} : vector<8x32xbf16>, vector<32x4xbf16>, vector<8x4xf32> -> vector<8x4xf32>
    %c32_13 = arith.constant 32 : index
    %c0_14 = arith.constant 0 : index
    %22 = vector.load %arg3[%c32_13, %c0_14] : memref<33x4xbf16, #tpu.memory_space<vmem>>, vector<1x4xbf16>
    %23 = arith.extf %22 : vector<1x4xbf16> to vector<1x4xf32>
    %24 = vector.broadcast %23 : vector<1x4xf32> to vector<8x4xf32>
    %25 = arith.addf %21, %24 : vector<8x4xf32>
    %c0_15 = arith.constant 0 : index
    %c0_16 = arith.constant 0 : index
    %26 = vector.load %arg4[%c0_15, %c0_16] : memref<8x4xf32, #tpu.memory_space<vmem>>, vector<8x4xf32>
    tpu.vector_store %arg4[%c0_15, %c0_16], %25 {strides = array<i32>} : memref<8x4xf32, #tpu.memory_space<vmem>>, vector<8x4xf32>,
    return
  }
}

</mosaic_0001>

<bundles_post_ra>
// kernel: tpu_custom_call.1
= control target key start
LH: loop header
LB: loop body
LE: loop exit
PB: predicated region body
PF: predicated region fallthrough
CT: control target
= control target key end

     0   :  { %vm31_vm0 = vcmask 130048   ;;  %vm69_vm1 = vcmask 261120   ;;  %vm123_vm2 = vcmask 31744   ;;  %s214_s1 = inlined_call_operand.vmem [shape: bf16[17,32], index: 1, kind: input, shape index: {}]   ;;  %s215_s0 = inlined_call_operand.vmem [shape: f32[8,16], index: 0, kind: input, shape index: {}]   ;;  %s216_s2 = inlined_call_operand.vmem [shape: bf16[33,32], index: 2, kind: input, shape index: {}]   ;;  %s217_s3 = inlined_call_operand.vmem [shape: bf16[33,4], index: 3, kind: input, shape index: {}]   ;;  %s218_s4 = inlined_call_operand.vmem [shape: f32[8,4], index: 4, kind: output, shape index: {}]  }
   0x1   :  { %v152_v0 = vld [vmem:[%s214_s1] sm:$0xff]  ;;  %v154_v3 = vld [vmem:[%s216_s2 + $0x8] sm:$0xff]  ;;  %v54_v15 = vld [vmem:[%s216_s2 + $0x10] sm:$0x1] }
   0x2   :  { %v18_v1 = vld [vmem:[%s215_s0] sm:$0xff]  ;;  %42 = vmatpush.bf16.msra.mxu0 %v152_v0  ;;  %79 = vmatpush.bf16.msra.mxu1 %v154_v3  ;;  %v22_v5 = vld [vmem:[%s214_s1 + $0x8] sm:$0x1]  ;;  %v55_v16 = vunpack.c.l.bf16 %v54_v15  ;;  %v92_v23 = vld [vmem:[%s217_s3 + $0x10] sm:$0x1] }
   0x3   :  { %v19_v2 = vpack.c.bf16 %v18_v1, %v18_v1  ;;  %v153_v4 = vld [vmem:[%s216_s2] sm:$0xff]  ;;  %v23_v6 = vunpack.c.l.bf16 %v22_v5  ;;  %v156_v13 = vld [vmem:[%s217_s3 + $0x8] sm:$0xff]  ;;  %v93_v24 = vunpack.c.l.bf16 %v92_v23 }
   0x4   :  { %116 = vmatpush.bf16.msra.mxu2 %v156_v13  ;;  %v155_v14 = vld [vmem:[%s217_s3] sm:$0xff]  ;;  %v56_v17 = vperm.slane %v55_v16, 0 }
   0x5   :  { %133 = vmatmul.msk.bf16.vlgmr.msra.gmra.mxu0 %vm31_vm0, %v19_v2  ;;  %v24_v7 = vperm.slane %v23_v6, 0  ;;  %v94_v25 = vperm.slane %v93_v24, 0 }
   0x6   :  { %80 = vmatpush.bf16.msra.mxu1 %v153_v4 }
   0x8   :  { %117 = vmatpush.bf16.msra.mxu2 %v155_v14 }
  0x82   :  { %v44_v8 = vpop.f32.mrf.mxu0 }
  0x83   :  { %v45_v9 = vadd.f32 %v44_v8, %v24_v7 }
  0x85   :  { %v48_v10 = vmax.f32 %v45_v9, 0.0 }
  0x87   :  { %v49_v11 = vpack.c.bf16 %v48_v10, %v48_v10 }
  0x89   :  { %142 = vmatmul.msk.bf16.vlgmr.msra.gmra.mxu1 %vm69_vm1, %v49_v11 }
  0x8a   :  { %v46_v12 = vpop.f32.mrf.mxu0 }
 0x106   :  { %v82_v18 = vpop.f32.mrf.mxu1 }
 0x107   :  { %v83_v19 = vadd.f32 %v82_v18, %v56_v17 }
 0x109   :  { %v86_v20 = vmax.f32 %v83_v19, 0.0 }
 0x10b   :  { %v87_v21 = vpack.c.bf16 %v86_v20, %v86_v20 }
 0x10d   :  { %151 = vmatmul.msk.bf16.vlgmr.msra.gmra.mxu2 %vm69_vm1, %v87_v21 }
 0x10e   :  { %v84_v22 = vpop.f32.mrf.mxu1 }
 0x190   :  { %v119_v26 = vpop.f32.mrf.mxu2 }
 0x191   :  { %v120_v27 = vadd.f32 %v119_v26, %v94_v25 }
 0x193   :  { %124 = vst.msk [vmem:[%s218_s4] sm:$0xff] %vm123_vm2, %v120_v27 }
 0x198   :  { %v121_v28 = vpop.f32.mrf.mxu2 }

</bundles_post_ra>
